<compile_context>
chip_gen: v5e
topology: v5e:2x2
jax: 0.10.0
libtpu: 0.0.40
codegen_flags: <defaults>
</compile_context>

<pallas_src>
import math

import jax
import jax.numpy as jnp
import numpy as np
from jax.experimental import pallas as pl
from jax.experimental.pallas import tpu as pltpu


# ---------------------------------------------------------------------------
# layout / generation helpers
# ---------------------------------------------------------------------------
def _slab_shape(n):
    """Flatten n neurons into a lane-dense (rows, lanes) slab (lanes % 128 == 0).

    Small populations get one wide full-extent block (exempt from the (8,128)
    divisibility rule).  Larger populations get the widest lane dim whose row
    count is a multiple of 32, so rows can be tiled on the int8 fast path and
    sharded across TensorCores.
    """
    assert n % 128 == 0, "population size must be a multiple of 128 for this layout"
    widths = (8192, 4096, 2048, 1024, 512, 256, 128)
    if n * 4 <= (1 << 20):                        # tiny: single wide block
        for lanes in widths:
            if n % lanes == 0:
                return n // lanes, lanes
    for lanes in widths:                          # row-tileable wide slab
        if n % lanes == 0 and (n // lanes) % 32 == 0:
            return n // lanes, lanes
    return n // 128, 128                          # fallback (full-extent block)


def _gen_params():
    """(target f32 tile bytes, vmem_limit_bytes or None) per TPU generation."""
    kind = ""
    try:
        kind = jax.devices()[0].device_kind.lower()
    except Exception:
        pass
    try:
        vmem_phys = pltpu.get_tpu_info().vmem_capacity_bytes
    except Exception:
        vmem_phys = 128 << 20
    if "v5 lite" in kind or "v5e" in kind or "v5lite" in kind:
        # v5e: 16 MiB scoped-VMEM default, slow HBM -> 1 MiB tiles are enough.
        return (1 << 20), None
    # v6e (128 MiB physical) / v7x (64 MiB physical): ~2 MiB tiles; the fused
    # sim keeps ~10-11 tile-equivalents live, so budget VMEM explicitly.
    return (2 << 20), int(min(48 << 20, vmem_phys * 3 // 4))


def _pick_block_rows(rows, lanes, *, target_bytes, min_tiles=2):
    """Row-tile size: multiple of 32, divides rows, ~target_bytes f32 per tile,
    and >= min_tiles tiles when the population allows it (v7x megacore)."""
    if rows < 32 or rows % 32:
        return rows                               # single full-extent block
    max_rows = max(32, (target_bytes // (lanes * 4)) // 32 * 32)
    if rows >= min_tiles * 32:                    # keep both TensorCores busy
        max_rows = min(max_rows, max(32, (rows // min_tiles) // 32 * 32))
    br = min(rows, max_rows)
    br -= br % 32
    br = max(br, 32)
    while br > 32 and rows % br:
        br -= 32
    return br if rows % br == 0 else rows


def _compiler_params(dims, vmem_limit):
    kw = dict(dimension_semantics=dims)
    if vmem_limit is not None:
        kw["vmem_limit_bytes"] = int(vmem_limit)
    return pltpu.CompilerParams(**kw)


def _fold_constants(*, R, C, tau_s, trace_scale, threshold, dt, u_rest):
    """Fold the LIF update into f32 compile-time constants.

    u - (dt/tau)*(u - u_rest - R*i)  ==  (1-a)*u + a*u_rest + (a*R)*i,  a = dt/tau.
    Everything is rounded to f32 once so kernel and reference share exact values.
    """
    f = np.float32
    tau = f(R) * f(C)
    a = f(dt) / tau
    return dict(
        one_minus_a=float(f(1.0) - a),
        a_u_rest=float(a * f(u_rest)),
        a_R=float(a * f(R)),
        u_rest=float(f(u_rest)),
        threshold=float(f(threshold)),
        trace_decay=float(f(np.exp(-f(dt) / f(tau_s)))),
        trace_scale=float(f(trace_scale)),
    )


# ---------------------------------------------------------------------------
# kernels (constants baked in at trace time)
# ---------------------------------------------------------------------------
def _make_step_kernel(c):
    one_minus_a, a_u_rest, a_R = c["one_minus_a"], c["a_u_rest"], c["a_R"]
    u_rest, threshold = c["u_rest"], c["threshold"]
    trace_decay, trace_scale = c["trace_decay"], c["trace_scale"]

    def kernel(i_ref, u_ref, tr_ref, u_out_ref, s_out_ref, tr_out_ref):
        # drive streamed in its native (possibly bf16) dtype; cast in-kernel
        i = i_ref[...].astype(jnp.float32)
        # 1) leaky integration (folded constants)
        u_new = one_minus_a * u_ref[...] + a_u_rest + a_R * i
        # 2) spike condition + reset-on-spike
        s = u_new >= threshold
        u_out_ref[...] = jnp.where(s, u_rest, u_new)
        s_out_ref[...] = s.astype(jnp.int8)          # narrow spike store (0/1)
        # 3) additive spike-trace update
        s_f = s.astype(jnp.float32)
        if trace_scale == 1.0:                       # fold trace_scale == 1 away
            tr_out_ref[...] = tr_ref[...] * trace_decay + s_f
        else:
            tr_out_ref[...] = tr_ref[...] * trace_decay + trace_scale * s_f

    return kernel


def _make_sim_kernel(c):
    one_minus_a, a_u_rest, a_R = c["one_minus_a"], c["a_u_rest"], c["a_R"]
    u_rest, threshold = c["u_rest"], c["threshold"]
    trace_decay, trace_scale = c["trace_decay"], c["trace_scale"]

    def kernel(i_ref, u0_ref, tr0_ref, s_out_ref, u_ref, tr_ref):
        t = pl.program_id(1)                         # time axis (inner, "arbitrary")

        @pl.when(t == 0)
        def _():                                     # load initial state into the
            u_ref[...] = u0_ref[...]                 # VMEM-resident output blocks
            tr_ref[...] = tr0_ref[...]

        i = i_ref[...].astype(jnp.float32)
        u_new = one_minus_a * u_ref[...] + a_u_rest + a_R * i
        s = u_new >= threshold
        u_ref[...] = jnp.where(s, u_rest, u_new)     # state stays resident in VMEM
        s_f = s.astype(jnp.float32)
        if trace_scale == 1.0:
            tr_ref[...] = tr_ref[...] * trace_decay + s_f
        else:
            tr_ref[...] = tr_ref[...] * trace_decay + trace_scale * s_f
        s_out_ref[...] = s.astype(jnp.int8)

    return kernel


# ---------------------------------------------------------------------------
# wrappers
# ---------------------------------------------------------------------------
def lif_population_step(traces_in, u, traces_prev, *, R=1.0, C=5.0, tau_s=10.0,
                        trace_scale=1.0, threshold=-55.0, dt=1.0, u_rest=-70.0):
    """One LIFPopulation.forward step.

    `traces_in` may be any float dtype (bf16 recommended — it is streamed as-is
    and cast in-kernel).  Returns (u_new, spikes_int8, traces_new); spikes are
    int8 {0,1}.
    """
    shape = u.shape
    n = math.prod(shape)
    rows, lanes = _slab_shape(n)
    target_bytes, vmem_limit = _gen_params()
    br = _pick_block_rows(rows, lanes, target_bytes=target_bytes)
    consts = _fold_constants(R=R, C=C, tau_s=tau_s, trace_scale=trace_scale,
                             threshold=threshold, dt=dt, u_rest=u_rest)
    kernel = _make_step_kernel(consts)

    i2 = traces_in.reshape(rows, lanes)              # native dtype, no upcast
    u2 = u.astype(jnp.float32).reshape(rows, lanes)
    tr2 = traces_prev.astype(jnp.float32).reshape(rows, lanes)

    tile = pl.BlockSpec((br, lanes), lambda p: (p, 0))

    u_new, s_i8, tr_new = pl.pallas_call(
        kernel,
        grid=(rows // br,),
        in_specs=[tile, tile, tile],
        out_specs=(tile, tile, tile),
        out_shape=(jax.ShapeDtypeStruct((rows, lanes), jnp.float32),
                   jax.ShapeDtypeStruct((rows, lanes), jnp.int8),
                   jax.ShapeDtypeStruct((rows, lanes), jnp.float32)),
        input_output_aliases={1: 0, 2: 2},           # u / traces updated in place
        compiler_params=_compiler_params(("parallel",), vmem_limit),
    )(i2, u2, tr2)

    return u_new.reshape(shape), s_i8.reshape(shape), tr_new.reshape(shape)


def lif_population_simulate(traces_in_T, u, traces_prev, *, R=1.0, C=5.0,
                            tau_s=10.0, trace_scale=1.0, threshold=-55.0,
                            dt=1.0, u_rest=-70.0):
    """Fused T-step simulation: one pallas_call, state resident in VMEM.

    `traces_in_T` has a leading time axis and is streamed in its native dtype
    (bf16 recommended).  Equivalent to calling LIFPopulation.forward T times.
    Returns (u_final, spikes_int8[T, ...], traces_final).
    """
    T = traces_in_T.shape[0]
    shape = u.shape
    n = math.prod(shape)
    rows, lanes = _slab_shape(n)
    target_bytes, vmem_limit = _gen_params()
    br = _pick_block_rows(rows, lanes, target_bytes=target_bytes)
    consts = _fold_constants(R=R, C=C, tau_s=tau_s, trace_scale=trace_scale,
                             threshold=threshold, dt=dt, u_rest=u_rest)
    kernel = _make_sim_kernel(consts)

    drive2 = traces_in_T.reshape(T, rows, lanes)     # native dtype, no upcast
    u2 = u.astype(jnp.float32).reshape(rows, lanes)
    tr2 = traces_prev.astype(jnp.float32).reshape(rows, lanes)

    state_spec = pl.BlockSpec((br, lanes), lambda p, t: (p, 0))          # resident
    time_spec = pl.BlockSpec((None, br, lanes), lambda p, t: (t, p, 0))  # streamed

    s_all, u_fin, tr_fin = pl.pallas_call(
        kernel,
        grid=(rows // br, T),                        # (population tiles, time)
        in_specs=[time_spec, state_spec, state_spec],
        out_specs=(time_spec, state_spec, state_spec),
        out_shape=(jax.ShapeDtypeStruct((T, rows, lanes), jnp.int8),
                   jax.ShapeDtypeStruct((rows, lanes), jnp.float32),
                   jax.ShapeDtypeStruct((rows, lanes), jnp.float32)),
        input_output_aliases={1: 1, 2: 2},           # state updated in place
        compiler_params=_compiler_params(("parallel", "arbitrary"), vmem_limit),
    )(drive2, u2, tr2)

    return (u_fin.reshape(shape),
            s_all.reshape((T,) + shape),
            tr_fin.reshape(shape))


# ---------------------------------------------------------------------------
# demo + correctness check
# ---------------------------------------------------------------------------
if __name__ == "__main__":
    key = jax.random.PRNGKey(0)
    pop_shape = (2, 4, 16, 16)     # population topology -> 2048 neurons
    T = 8                          # fused simulation length

    # Model hyper-parameters (module defaults R=inf, C=0 give tau=nan, so pick
    # finite, modifiable values as the docstring requires).
    params = dict(R=1.0, C=5.0, tau_s=10.0, trace_scale=1.0,
                  threshold=-55.0, dt=1.0, u_rest=-70.0)

    # Initial state exactly as in __init__ / reset_state_variables.
    u0 = jnp.full(pop_shape, params["u_rest"], dtype=jnp.float32)
    traces0 = jnp.zeros(pop_shape, dtype=jnp.float32)

    # Input spike traces for T steps; streamed as bf16 (half the HBM traffic).
    drive = (jax.random.uniform(key, (T,) + pop_shape, dtype=jnp.float32)
             * 150.0).astype(jnp.bfloat16)

    # numpy reference using the same folded f32 constants / op order as the
    # kernel; the drive is cast bf16 -> f32 exactly as the kernel does.
    c = _fold_constants(**params)

    def np_step(i, u, tr):
        u_new = (np.float32(c["one_minus_a"]) * u + np.float32(c["a_u_rest"])
                 + np.float32(c["a_R"]) * i)
        s = u_new >= np.float32(c["threshold"])
        u_out = np.where(s, np.float32(c["u_rest"]), u_new).astype(np.float32)
        tr_out = (tr * np.float32(c["trace_decay"])
                  + np.float32(c["trace_scale"]) * s.astype(np.float32))
        return u_out, s, tr_out.astype(np.float32)

    drive_np = np.asarray(drive.astype(jnp.float32))
    u_np, tr_np = np.asarray(u0), np.asarray(traces0)

    # ---- 1) single LIFPopulation.forward step ----
    u1, s1, tr1 = lif_population_step(drive[0], u0, traces0, **params)
    jax.block_until_ready((u1, s1, tr1))

    u_ref, s_ref, tr_ref = np_step(drive_np[0], u_np, tr_np)
    np.testing.assert_allclose(np.asarray(u1), u_ref, rtol=0, atol=1e-5)
    np.testing.assert_array_equal(np.asarray(s1).astype(bool), s_ref)
    np.testing.assert_allclose(np.asarray(tr1), tr_ref, rtol=0, atol=1e-5)

    # ---- 2) fused T-step simulation (state resident in VMEM) ----
    uT, sT, trT = lif_population_simulate(drive, u0, traces0, **params)
    jax.block_until_ready((uT, sT, trT))

    s_all_ref = np.zeros((T,) + pop_shape, dtype=bool)
    u_r, tr_r = u_np, tr_np
    for t in range(T):
        u_r, s_t, tr_r = np_step(drive_np[t], u_r, tr_r)
        s_all_ref[t] = s_t
    np.testing.assert_allclose(np.asarray(uT), u_r, rtol=0, atol=1e-4)
    np.testing.assert_array_equal(np.asarray(sT).astype(bool), s_all_ref)
    np.testing.assert_allclose(np.asarray(trT), tr_r, rtol=0, atol=1e-4)

    print("KERNEL_OK")
</pallas_src>

<mosaic_0001>
module attributes {stable_mosaic.version = 11 : i64} {
  func.func @kernel(%arg0: i32, %arg1: memref<1x2048xbf16, #tpu.memory_space<vmem>>, %arg2: memref<1x2048xf32, #tpu.memory_space<vmem>>, %arg3: memref<1x2048xf32, #tpu.memory_space<vmem>>, %arg4: memref<1x2048xf32, #tpu.memory_space<vmem>>, %arg5: memref<1x2048xi8, #tpu.memory_space<vmem>>, %arg6: memref<1x2048xf32, #tpu.memory_space<vmem>>) attributes {dimension_semantics = [#tpu.dimension_semantics<parallel>], iteration_bounds = array<i64: 1>, scalar_prefetch = 0 : i64, scratch_operands = 0 : i64, tpu.core_type = #tpu.core_type<tc>, window_params = [{transform_indices = @transform_0, window_bounds = array<i64: 1, 2048>}, {transform_indices = @transform_1, window_bounds = array<i64: 1, 2048>}, {transform_indices = @transform_2, window_bounds = array<i64: 1, 2048>}, {transform_indices = @transform_3, window_bounds = array<i64: 1, 2048>}, {transform_indices = @transform_4, window_bounds = array<i64: 1, 2048>}, {transform_indices = @transform_5, window_bounds = array<i64: 1, 2048>}]} {
    %c0 = arith.constant 0 : index
    %c0_0 = arith.constant 0 : index
    %0 = vector.load %arg1[%c0, %c0_0] : memref<1x2048xbf16, #tpu.memory_space<vmem>>, vector<1x2048xbf16>
    %1 = arith.extf %0 : vector<1x2048xbf16> to vector<1x2048xf32>
    %c0_1 = arith.constant 0 : index
    %c0_2 = arith.constant 0 : index
    %2 = vector.load %arg2[%c0_1, %c0_2] : memref<1x2048xf32, #tpu.memory_space<vmem>>, vector<1x2048xf32>
    %cst = arith.constant 8.000000e-01 : f32
    %3 = vector.broadcast %cst : f32 to vector<1x2048xf32>
    %4 = arith.mulf %3, %2 : vector<1x2048xf32>
    %cst_3 = arith.constant -1.400000e+01 : f32
    %5 = vector.broadcast %cst_3 : f32 to vector<1x2048xf32>
    %6 = arith.addf %4, %5 : vector<1x2048xf32>
    %cst_4 = arith.constant 2.000000e-01 : f32
    %7 = vector.broadcast %cst_4 : f32 to vector<1x2048xf32>
    %8 = arith.mulf %7, %1 : vector<1x2048xf32>
    %9 = arith.addf %6, %8 : vector<1x2048xf32>
    %cst_5 = arith.constant -5.500000e+01 : f32
    %10 = vector.broadcast %cst_5 : f32 to vector<1x2048xf32>
    %11 = arith.cmpf oge, %9, %10 : vector<1x2048xf32>
    %cst_6 = arith.constant -7.000000e+01 : f32
    %12 = vector.broadcast %cst_6 : f32 to vector<1x2048xf32>
    %13 = arith.select %11, %12, %9 : vector<1x2048xi1>, vector<1x2048xf32>
    %c0_7 = arith.constant 0 : index
    %c0_8 = arith.constant 0 : index
    %14 = vector.load %arg4[%c0_7, %c0_8] : memref<1x2048xf32, #tpu.memory_space<vmem>>, vector<1x2048xf32>
    tpu.vector_store %arg4[%c0_7, %c0_8], %13 {strides = array<i32>} : memref<1x2048xf32, #tpu.memory_space<vmem>>, vector<1x2048xf32>,
    %15 = arith.extui %11 : vector<1x2048xi1> to vector<1x2048xi8>
    %c0_9 = arith.constant 0 : index
    %c0_10 = arith.constant 0 : index
    %16 = vector.load %arg5[%c0_9, %c0_10] : memref<1x2048xi8, #tpu.memory_space<vmem>>, vector<1x2048xi8>
    tpu.vector_store %arg5[%c0_9, %c0_10], %15 {strides = array<i32>} : memref<1x2048xi8, #tpu.memory_space<vmem>>, vector<1x2048xi8>,
    %17 = arith.extui %11 : vector<1x2048xi1> to vector<1x2048xi32>
    %18 = arith.sitofp %17 : vector<1x2048xi32> to vector<1x2048xf32>
    %c0_11 = arith.constant 0 : index
    %c0_12 = arith.constant 0 : index
    %19 = vector.load %arg3[%c0_11, %c0_12] : memref<1x2048xf32, #tpu.memory_space<vmem>>, vector<1x2048xf32>
    %cst_13 = arith.constant 0.904837429 : f32
    %20 = vector.broadcast %cst_13 : f32 to vector<1x2048xf32>
    %21 = arith.mulf %19, %20 : vector<1x2048xf32>
    %22 = arith.addf %21, %18 : vector<1x2048xf32>
    %c0_14 = arith.constant 0 : index
    %c0_15 = arith.constant 0 : index
    %23 = vector.load %arg6[%c0_14, %c0_15] : memref<1x2048xf32, #tpu.memory_space<vmem>>, vector<1x2048xf32>
    tpu.vector_store %arg6[%c0_14, %c0_15], %22 {strides = array<i32>} : memref<1x2048xf32, #tpu.memory_space<vmem>>, vector<1x2048xf32>,
    return
  }
  func.func @transform_0(%arg0: i32) -> (i32, i32) {
    %c0_i32 = arith.constant 0 : i32
    %c0_i32_0 = arith.constant 0 : i32
    return %arg0, %c0_i32 : i32, i32
  }
  func.func @transform_1(%arg0: i32) -> (i32, i32) {
    %c0_i32 = arith.constant 0 : i32
    %c0_i32_0 = arith.constant 0 : i32
    return %arg0, %c0_i32 : i32, i32
  }
  func.func @transform_2(%arg0: i32) -> (i32, i32) {
    %c0_i32 = arith.constant 0 : i32
    %c0_i32_0 = arith.constant 0 : i32
    return %arg0, %c0_i32 : i32, i32
  }
  func.func @transform_3(%arg0: i32) -> (i32, i32) {
    %c0_i32 = arith.constant 0 : i32
    %c0_i32_0 = arith.constant 0 : i32
    return %arg0, %c0_i32 : i32, i32
  }
  func.func @transform_4(%arg0: i32) -> (i32, i32) {
    %c0_i32 = arith.constant 0 : i32
    %c0_i32_0 = arith.constant 0 : i32
    return %arg0, %c0_i32 : i32, i32
  }
  func.func @transform_5(%arg0: i32) -> (i32, i32) {
    %c0_i32 = arith.constant 0 : i32
    %c0_i32_0 = arith.constant 0 : i32
    return %arg0, %c0_i32 : i32, i32
  }
}

</mosaic_0001>

<bundles_post_ra>
// kernel: tpu_custom_call.1
= control target key start
LH: loop header
LB: loop body
LE: loop exit
PB: predicated region body
PF: predicated region fallthrough
CT: control target
= control target key end

     0   :  { %11 = vsyncpa [#allocation3], 0  ;;  %s742_s0 = inlined_call_operand.vmem [shape: bf16[1,2048], index: 0, kind: input, shape index: {}]   ;;  %s743_s1 = inlined_call_operand.hbm [shape: f32[1,2048], index: 1, kind: input, shape index: {}, may-alias: {1,3}]   ;;  %s744_s2 = inlined_call_operand.hbm [shape: f32[1,2048], index: 2, kind: input, shape index: {}, may-alias: {2,5}]   ;;  %s745_s3 = inlined_call_operand.hbm [shape: f32[1,2048], index: 3, kind: output, shape index: {0}, may-alias: {1,3}]   ;;  %s746_s4 = inlined_call_operand.hbm [shape: s8[1,2048], index: 4, kind: output, shape index: {1}]   ;;  %s747_s5 = inlined_call_operand.hbm [shape: f32[1,2048], index: 5, kind: output, shape index: {2}, may-alias: {2,5}]  }
   0x1   :  { %12 = vsyncpa [#allocation6], 0 }
   0x2   :  { %13 = vsyncpa [#allocation4], 0 }
   0x3   :  { %14 = vsyncpa [#allocation9], 0  ;;  %s22_s20 = sshll.u32 %s743_s1, 4  ;;  %s525_s21 = smov [#allocation2]   ;;  %s23_s20 = int_to_ptr.hbm [resolvable:$true] %s22_s20 }
   0x4   :  { %s24_s22 = sshll.u32 %s525_s21, 4  ;;  %s33_s25 = sshll.u32 %s744_s2, 4  ;;  %s25_s22 = int_to_ptr.vmem [resolvable:$true] %s24_s22  ;;  %s34_s25 = int_to_ptr.hbm [resolvable:$true] %s33_s25 }
   0x5   :  { %27 = dma.hbm_to_vmem [thread:$0]  %s23_s20, 256, %s25_s22, [#allocation3]  }
   0x6   :  { %s526_s26 = smov [#allocation5]  }
   0x7   :  { %s35_s27 = sshll.u32 %s526_s26, 4  ;;  %s36_s27 = int_to_ptr.vmem [resolvable:$true] %s35_s27 }
   0x8   :  { %38 = dma.hbm_to_vmem [thread:$0]  %s34_s25, 256, %s36_s27, [#allocation6]  }
   0x9   :  { %517 = dma.done.wait [#allocation3], 256  }
   0xa   :  { %518 = vsyncadd [#allocation3], 4294967040 }
   0xb   :  { %519 = dma.done.wait [#allocation6], 256  }
   0xc   :  { %520 = vsyncadd [#allocation6], 4294967040  ;;  %vm751_vm0 = vcmask 1040384   ;;  %vm756_vm1 = vcmask 1042434   ;;  %vm750_vm2 = vcmask 1041408   ;;  %v527_v0 = vmov 286326784  }
   0xd   :  { %v572_v1 = vunpack.c.l.s4 %v527_v0  ;;  %vm753_vm3 = vcmask 1044484   ;;  %vm752_vm4 = vcmask 1046534   ;;  %v528_v2 = vmov 858989090   ;;  %v49_v4 = vld [vmem:[%s742_s0] sm:$0xff]  ;;  %v50_v5 = vld [vmem:[%s742_s0 + $0x8] sm:$0xff] }
   0xe   :  { %v574_v3 = vunpack.c.l.s4 %v528_v2  ;;  %v55_v6 = vld [vmem:[#allocation2] sm:$0xff]  ;;  %vm749_vm5 = vcmask 1045508   ;;  %vm748_vm6 = vcmask 1043456   ;;  %v529_v7 = vmov 1431651396   ;;  %v56_v13 = vld [vmem:[#allocation2 + $0x8] sm:$0xff] }
   0xf   :  { %v582_v8 = vunpack.c.l.s4 %v529_v7  ;;  %v51_v9 = vunpack.c.l.bf16 %v49_v4  ;;  %v52_v10 = vunpack.c.h.bf16 %v49_v4  ;;  %v53_v11 = vunpack.c.l.bf16 %v50_v5  ;;  %s533_s0 = smov [#allocation7]   ;;  %s342_s8 = sshll.u32 %s745_s3, 4  ;;  %s343_s8 = int_to_ptr.hbm [resolvable:$true] %s342_s8 }
  0x10   :  { %v54_v12 = vunpack.c.h.bf16 %v50_v5  ;;  %v57_v14 = vmul.f32 0.8, %v55_v6  ;;  %v58_v15 = vmul.f32 0.8, %v56_v13  ;;  %v118_v16 = vunpack.c.0.s8 %v572_v1  ;;  %s340_s30 = sshll.u32 %s533_s0, 4  ;;  %s534_s3 = smov [#allocation8]   ;;  %s341_s30 = int_to_ptr.vmem [resolvable:$true] %s340_s30 }
  0x11   :  { %v530_v17 = vmov 2004313702   ;;  %v61_v19 = vmul.f32 0.2, %v51_v9  ;;  %v62_v20 = vmul.f32 0.2, %v52_v10  ;;  %v122_v22 = vunpack.c.0.s8 %v574_v3 }
  0x12   :  { %v129_v18 = vunpack.c.l.s4 %v530_v17  ;;  %v63_v21 = vmul.f32 0.2, %v53_v11  ;;  %v59_v23 = vadd.f32 -14.0, %v57_v14  ;;  %v60_v24 = vadd.f32 -14.0, %v58_v15  ;;  %s351_s9 = sshll.u32 %s534_s3, 4  ;;  %s353_s12 = sshll.u32 %s746_s4, 4  ;;  %s352_s9 = int_to_ptr.vmem [resolvable:$true] %s351_s9  ;;  %s354_s12 = int_to_ptr.hbm [resolvable:$true] %s353_s12 }
  0x13   :  { %v64_v25 = vmul.f32 0.2, %v54_v12  ;;  %v126_v26 = vunpack.c.0.s8 %v582_v8  ;;  %v69_v27 = vrot.slane %v61_v19, 1  ;;  %v70_v28 = vrot.slane %v61_v19, 2  ;;  %s535_s13 = smov [#allocation10]   ;;  %s364_s17 = sshll.u32 %s747_s5, 4  ;;  %s365_s17 = int_to_ptr.hbm [resolvable:$true] %s364_s17 }
  0x14   :  { %v71_v29 = vrot.slane %v61_v19, 3  ;;  %v72_v30 = vrot.slane %v62_v20, 4  ;;  %v73_v31 = vrot.slane %v62_v20, 5  ;;  %v74_v32 = vrot.slane %v62_v20, 6  ;;  %s362_s14 = sshll.u32 %s535_s13, 4  ;;  %s363_s14 = int_to_ptr.vmem [resolvable:$true] %s362_s14 }
  0x15   :  { %v75_v33 = vrot.slane %v62_v20, 7  ;;  %v76_v34 = vrot.slane %v63_v21, 1  ;;  %v77_v35 = vrot.slane %v63_v21, 2  ;;  %v78_v36 = vrot.slane %v63_v21, 3 }
  0x16   :  { %v79_v37 = vrot.slane %v64_v25, 4  ;;  %v80_v38 = vrot.slane %v64_v25, 5  ;;  %v81_v39 = vrot.slane %v64_v25, 6  ;;  %v82_v40 = vrot.slane %v64_v25, 7 }
  0x17   :  { %v84_v41 = vsel %vm751_vm0, %v61_v19, %v69_v27  ;;  %v86_v42 = vsel %vm756_vm1, %v70_v28, %v71_v29  ;;  %v90_v44 = vsel %vm753_vm3, %v72_v30, %v73_v31  ;;  %v92_v45 = vsel %vm752_vm4, %v74_v32, %v75_v33  ;;  %v328_v19 = vld [vmem:[#allocation5 + $0x8] sm:$0xff] }
  0x18   :  { %v88_v43 = vsel %vm750_vm2, %v84_v41, %v86_v42  ;;  %v97_v46 = vsel %vm751_vm0, %v63_v21, %v76_v34  ;;  %v94_v47 = vsel %vm749_vm5, %v90_v44, %v92_v45  ;;  %v98_v48 = vsel %vm756_vm1, %v77_v35, %v78_v36 }
  0x19   :  { %v100_v49 = vsel %vm753_vm3, %v79_v37, %v80_v38  ;;  %v101_v50 = vsel %vm752_vm4, %v81_v39, %v82_v40  ;;  %v96_v51 = vsel %vm748_vm6, %v88_v43, %v94_v47  ;;  %v99_v52 = vsel %vm750_vm2, %v97_v46, %v98_v48 }
  0x1a   :  { %v102_v53 = vsel %vm749_vm5, %v100_v49, %v101_v50  ;;  %vm289_vm7 = vsmask.f32 0  ;;  %v106_v55 = vadd.f32 %v96_v51, %v59_v23  ;;  %vm291_vm8 = vcmask 1041409  }
  0x1b   :  { %v103_v54 = vsel %vm748_vm6, %v99_v52, %v102_v53  ;;  %vm292_vm9 = vsmask.f32 1024  ;;  %v130_v57 = vunpack.c.0.s8 %v129_v18  ;;  %vm602_vm11 = vmand %vm751_vm0, %vm289_vm7  ;;  %vm296_vm12 = vsmask.f32 2048  ;;  %v327_v18 = vld [vmem:[#allocation5] sm:$0xff] }
  0x1c   :  { %v107_v56 = vadd.f32 %v103_v54, %v60_v24  ;;  %vm755_vm10 = vcmp.ge.f32.partialorder %v106_v55, -55.0  ;;  %v531_v59 = vmov 0   ;;  %vm608_vm14 = vmand %vm291_vm8, %vm292_vm9  ;;  %vm299_vm15 = vcmask 1043459  }
  0x1d   :  { %v114_v60 = vsel %vm755_vm10, 1, %v531_v59  ;;  %vm300_vm6 = vsmask.f32 3072  ;;  %vm294_vm8 = vmor %vm608_vm14, %vm602_vm11  ;;  %v329_v23 = vmul.f32 0.9048374, %v327_v18  ;;  %v532_v25 = vmov 0.0  }
  0x1e   :  { %vm754_vm13 = vcmp.ge.f32.partialorder %v107_v56, -55.0  ;;  %v119_v63 = vperm.slane %v114_v60, %v118_v16  ;;  %v123_v0 = vperm.slane %v114_v60, %v122_v22  ;;  %v127_v1 = vperm.slane %v114_v60, %v126_v26 }
  0x1f   :  { %v115_v62 = vsel %vm754_vm13, 1, %v531_v59  ;;  %v131_v2 = vperm.slane %v114_v60, %v130_v57  ;;  %vm297_vm13 = vmand %vm756_vm1, %vm296_vm12  ;;  %v330_v28 = vmul.f32 0.9048374, %v328_v19 }
  0x20   :  { %v135_v3 = vperm.slane %v115_v62, %v118_v16  ;;  %v139_v4 = vperm.slane %v115_v62, %v122_v22  ;;  %v143_v5 = vperm.slane %v115_v62, %v126_v26  ;;  %v147_v6 = vperm.slane %v115_v62, %v130_v57 }
  0x21   :  { %vm148_vm7 = vcmp.ne.s32.totalorder %v119_v63, 0  ;;  %vm149_vm5 = vcmp.ne.s32.totalorder %v123_v0, 0  ;;  %vm150_vm2 = vcmp.ne.s32.totalorder %v127_v1, 0  ;;  %vm151_vm9 = vcmp.ne.s32.totalorder %v131_v2, 0 }
  0x22   :  { %vm152_vm0 = vcmp.ne.s32.totalorder %v135_v3, 0  ;;  %vm153_vm4 = vcmp.ne.s32.totalorder %v139_v4, 0  ;;  %vm154_vm3 = vcmp.ne.s32.totalorder %v143_v5, 0  ;;  %vm155_vm10 = vcmp.ne.s32.totalorder %v147_v6, 0  ;;  %v319_v5 = vld [vmem:[#allocation8] sm:$0xff] }
  0x23   :  { %v156_v7 = vsel %vm148_vm7, 1, %v531_v59  ;;  %v157_v8 = vsel %vm149_vm5, 1, %v531_v59  ;;  %v158_v9 = vsel %vm150_vm2, 1, %v531_v59  ;;  %v159_v10 = vsel %vm151_vm9, 1, %v531_v59  ;;  %vm633_vm5 = vmor %vm297_vm13, %vm294_vm8 }
  0x24   :  { %v160_v11 = vsel %vm152_vm0, 1, %v531_v59  ;;  %v161_v12 = vsel %vm153_vm4, 1, %v531_v59  ;;  %v162_v13 = vsel %vm154_vm3, 1, %v531_v59  ;;  %v163_v14 = vsel %vm155_vm10, 1, %v531_v59  ;;  %vm639_vm0 = vmand %vm299_vm15, %vm300_vm6 }
  0x25   :  { %v164_v15 = vpack.c.b16 %v157_v8, %v156_v7  ;;  %v165_v16 = vpack.c.b16 %v159_v10, %v158_v9  ;;  %vm304_vm2 = vsmask.f32 4096  ;;  %v167_v20 = vpack.c.b16 %v161_v12, %v160_v11  ;;  %vm302_vm6 = vmor %vm639_vm0, %vm633_vm5 }
  0x26   :  { %v168_v21 = vpack.c.b16 %v163_v14, %v162_v13  ;;  %vm765_vm3 = vcmp.ge.f32.partialorder %v106_v55, -55.0  ;;  %vm766_vm4 = vcmp.ge.f32.partialorder %v107_v56, -55.0  ;;  %vm769_vm13 = vcmask 1044484  }
  0x27   :  { %v166_v24 = vpack.c.b8 %v165_v16, %v164_v15  ;;  %v384_v26 = vsel %vm765_vm3, 1.0, %v532_v25  ;;  %v385_v27 = vsel %vm766_vm4, 1.0, %v532_v25  ;;  %vm767_vm11 = vmmov %vm765_vm3  ;;  %vm307_vm15 = vcmask 1045509  }
  0x28   :  { %v110_v29 = vsel %vm767_vm11, -70.0, %v106_v55  ;;  %vm768_vm12 = vmmov %vm766_vm4  ;;  %v331_v31 = vadd.f32 %v384_v26, %v329_v23  ;;  %v332_v33 = vadd.f32 %v385_v27, %v330_v28  ;;  %v169_v34 = vpack.c.b8 %v168_v21, %v167_v20 }
  0x29   :  { %vm170_vm10 = vnez %v166_v24  ;;  %v111_v30 = vsel %vm768_vm12, -70.0, %v107_v56  ;;  %vm305_vm14 = vmand %vm769_vm13, %vm304_vm2  ;;  %112 = vst [vmem:[#allocation7] sm:$0xff] %v110_v29  ;;  %vm308_vm7 = vsmask.f32 5120  ;;  %vm312_vm4 = vsmask.f32 6144 }
  0x2a   :  { %v172_v32 = vsel %vm170_vm10, 16843009, %v531_v59  ;;  %113 = vst [vmem:[#allocation7 + $0x8] sm:$0xff] %v111_v30  ;;  %vm662_vm8 = vmor %vm305_vm14, %vm302_vm6  ;;  %vm171_vm2 = vnez %v169_v34  ;;  %vm315_vm5 = vcmask 1047559   ;;  %vm316_vm11 = vsmask.f32 7168 }
  0x2b   :  { %175 = vst [vmem:[#allocation1] ss:$9 sm:$0xff] %v172_v32  ;;  %345 = dma.vmem_to_hbm [thread:$0]  %s341_s30, 256, %s343_s8, [#allocation4]   ;;  %vm666_vm9 = vmand %vm307_vm15, %vm308_vm7  ;;  %v173_v37 = vsel %vm171_vm2, 16843009, %v531_v59 }
  0x2c   :  { %333 = vst [vmem:[#allocation10] sm:$0xff] %v331_v31  ;;  %vm310_vm3 = vmor %vm666_vm9, %vm662_vm8  ;;  %vm774_vm15 = vcmask 1046534   ;;  %vm781_vm8 = vcmask 1044484   ;;  %vm782_vm9 = vcmask 1041408  }
  0x2d   :  { %334 = vst [vmem:[#allocation10 + $0x8] sm:$0xff] %v332_v33  ;;  %vm313_vm7 = vmand %vm774_vm15, %vm312_vm4 }
  0x2e   :  { %vm690_vm4 = vmor %vm313_vm7, %vm310_vm3 }
  0x2f   :  { %vm783_vm3 = vmmov %vm774_vm15 }
  0x32   :  { %v176_v38 = vld [vmem:[#allocation1] sm:$0xff]  ;;  %v178_v39 = vld [vmem:[#allocation1 + $0x9] sm:$0xff]  ;;  %v180_v40 = vld [vmem:[#allocation1 + $0x12] sm:$0xff] }
  0x33   :  { %v182_v41 = vld [vmem:[#allocation1 + $0x1b] sm:$0xff]  ;;  %v184_v42 = vld [vmem:[#allocation1 + $0x24] sm:$0xff]  ;;  %v186_v43 = vld [vmem:[#allocation1 + $0x2d] sm:$0xff]  ;;  %vm210_vm0 = vnez %v176_v38  ;;  %vm211_vm10 = vnez %v178_v39  ;;  %vm212_vm6 = vnez %v180_v40 }
  0x34   :  { %v188_v44 = vld [vmem:[#allocation1 + $0x36] sm:$0xff]  ;;  %v190_v45 = vld [vmem:[#allocation1 + $0x3f] sm:$0xff]  ;;  %vm213_vm12 = vnez %v182_v41  ;;  %vm214_vm13 = vnez %v184_v42  ;;  %vm215_vm14 = vnez %v186_v43  ;;  %v226_v46 = vsel %vm210_vm0, 16843009, %v531_v59  ;;  %vm696_vm0 = vmand %vm315_vm5, %vm316_vm11 }
  0x35   :  { %193 = vst [vmem:[#allocation1] ss:$9 sm:$0xff] %v173_v37  ;;  %vm216_vm2 = vnez %v188_v44  ;;  %vm217_vm1 = vnez %v190_v45  ;;  %v227_v47 = vsel %vm211_vm10, 16843009, %v531_v59  ;;  %v228_v48 = vsel %vm212_vm6, 16843009, %v531_v59  ;;  %vm318_vm6 = vmor %vm696_vm0, %vm690_vm4 }
  0x36   :  { %v229_v49 = vsel %vm213_vm12, 16843009, %v531_v59  ;;  %v230_v50 = vsel %vm214_vm13, 16843009, %v531_v59  ;;  %v231_v51 = vsel %vm215_vm14, 16843009, %v531_v59 }
  0x37   :  { %v232_v52 = vsel %vm216_vm2, 16843009, %v531_v59  ;;  %v233_v53 = vsel %vm217_vm1, 16843009, %v531_v59  ;;  %v242_v54 = vrot.slane %v227_v47, 7  ;;  %v243_v55 = vrot.slane %v228_v48, 6 }
  0x38   :  { %v244_v57 = vrot.slane %v229_v49, 5  ;;  %v245_v58 = vrot.slane %v230_v50, 4  ;;  %v246_v60 = vrot.slane %v231_v51, 3  ;;  %v247_v61 = vrot.slane %v232_v52, 2 }
  0x39   :  { %v248_v63 = vrot.slane %v233_v53, 1  ;;  %vm779_vm1 = vcmask 1040384   ;;  %vm780_vm10 = vcmask 1042434   ;;  %vm784_vm5 = vcmask 1045508  }
  0x3a   :  { %v258_v0 = vsel %vm779_vm1, %v226_v46, %v242_v54  ;;  %v261_v1 = vsel %vm780_vm10, %v243_v55, %v244_v57  ;;  %v265_v2 = vsel %vm781_vm8, %v245_v58, %v246_v60  ;;  %vm785_vm11 = vcmask 1043456  }
  0x3b   :  { %v262_v3 = vsel %vm782_vm9, %v258_v0, %v261_v1  ;;  %v268_v4 = vsel %vm783_vm3, %v247_v61, %v248_v63  ;;  %vm786_vm8 = vcmask 1040384   ;;  %vm787_vm9 = vcmask 1042434  }
  0x3c   :  { %v269_v6 = vsel %vm784_vm5, %v265_v2, %v268_v4  ;;  %v194_v7 = vld [vmem:[#allocation1] sm:$0xff]  ;;  %v196_v8 = vld [vmem:[#allocation1 + $0x9] sm:$0xff]  ;;  %v198_v9 = vld [vmem:[#allocation1 + $0x12] sm:$0xff]  ;;  %vm788_vm3 = vcmask 1041408   ;;  %vm789_vm5 = vcmask 1044484  }
  0x3d   :  { %v270_v10 = vsel %vm785_vm11, %v262_v3, %v269_v6  ;;  %v200_v11 = vld [vmem:[#allocation1 + $0x1b] sm:$0xff]  ;;  %v202_v12 = vld [vmem:[#allocation1 + $0x24] sm:$0xff]  ;;  %v204_v13 = vld [vmem:[#allocation1 + $0x2d] sm:$0xff]  ;;  %vm219_vm12 = vnez %v196_v8  ;;  %vm220_vm13 = vnez %v198_v9  ;;  %vm218_vm10 = vnez %v194_v7 }
  0x3e   :  { %v320_v14 = vsel %vm318_vm6, %v270_v10, %v319_v5  ;;  %v206_v15 = vld [vmem:[#allocation1 + $0x36] sm:$0xff]  ;;  %v208_v16 = vld [vmem:[#allocation1 + $0x3f] sm:$0xff]  ;;  %vm221_vm14 = vnez %v200_v11  ;;  %vm222_vm15 = vnez %v202_v12  ;;  %vm223_vm7 = vnez %v204_v13 }
  0x3f   :  { %321 = vst [vmem:[#allocation8] sm:$0xff] %v320_v14  ;;  %vm224_vm2 = vnez %v206_v15  ;;  %vm225_vm1 = vnez %v208_v16  ;;  %v235_v17 = vsel %vm219_vm12, 16843009, %v531_v59  ;;  %v236_v18 = vsel %vm220_vm13, 16843009, %v531_v59 }
  0x40   :  { %v237_v19 = vsel %vm221_vm14, 16843009, %v531_v59  ;;  %v238_v20 = vsel %vm222_vm15, 16843009, %v531_v59  ;;  %v239_v21 = vsel %vm223_vm7, 16843009, %v531_v59 }
  0x41   :  { %v240_v22 = vsel %vm224_vm2, 16843009, %v531_v59  ;;  %v241_v23 = vsel %vm225_vm1, 16843009, %v531_v59  ;;  %v249_v24 = vrot.slane %v235_v17, 7  ;;  %v250_v25 = vrot.slane %v236_v18, 6 }
  0x42   :  { %v251_v26 = vrot.slane %v237_v19, 5  ;;  %v252_v27 = vrot.slane %v238_v20, 4  ;;  %v234_v28 = vsel %vm218_vm10, 16843009, %v531_v59  ;;  %v253_v29 = vrot.slane %v239_v21, 3  ;;  %v322_v59 = vld [vmem:[#allocation8 + $0x8] sm:$0xff] }
  0x43   :  { %v254_v30 = vrot.slane %v240_v22, 2  ;;  %v255_v31 = vrot.slane %v241_v23, 1  ;;  %v274_v32 = vsel %vm786_vm8, %v234_v28, %v249_v24  ;;  %vm790_vm11 = vcmask 1046534  }
  0x44   :  { %v277_v33 = vsel %vm787_vm9, %v250_v25, %v251_v26  ;;  %v281_v35 = vsel %vm789_vm5, %v252_v27, %v253_v29  ;;  %vm791_vm12 = vcmask 1045508   ;;  %vm792_vm13 = vcmask 1043456  }
  0x45   :  { %v278_v34 = vsel %vm788_vm3, %v274_v32, %v277_v33  ;;  %v284_v36 = vsel %vm790_vm11, %v254_v30, %v255_v31 }
  0x46   :  { %v285_v37 = vsel %vm791_vm12, %v281_v35, %v284_v36 }
  0x47   :  { %v286_v38 = vsel %vm792_vm13, %v278_v34, %v285_v37 }
  0x48   :  { %v323_v39 = vsel %vm318_vm6, %v286_v38, %v322_v59 }
  0x49   :  { %324 = vst [vmem:[#allocation8 + $0x8] sm:$0xff] %v323_v39 }
  0x4a   :  { %356 = dma.vmem_to_hbm [thread:$0]  %s352_s9, 256, %s354_s12, [#allocation9]  }
  0x4b   :  { %367 = dma.vmem_to_hbm [thread:$0]  %s363_s14, 256, %s365_s17, [#allocation9]  }
  0x4c   :  { %521 = dma.done.wait [#allocation4], 256  }
  0x4d   :  { %522 = vsyncadd [#allocation4], 4294967040 }
  0x4e   :  { %523 = dma.done.wait [#allocation9], 512  }
  0x4f   :  { %524 = vsyncadd [#allocation9], 4294966784 }
  0x50   :  { %380 = vsyncpa [#allocation3], 1 }
  0x51   :  { %381 = vsyncpa [#allocation6], 1 }
  0x52   :  { %382 = vsyncpa [#allocation4], 1 }
  0x53   :  { %383 = vsyncpa [#allocation9], 1 }

</bundles_post_ra>
